<compile_context>
chip_gen: v5e
topology: v5e:2x2
jax: 0.10.0
libtpu: 0.0.40
codegen_flags: <defaults>
</compile_context>

<pallas_src>
import functools

import jax
import jax.numpy as jnp
from jax.experimental import pallas as pl
from jax.experimental.pallas import tpu as pltpu

_LANES = 128
_SUBLANES = 8
_MAX_ROW_BLOCK = 1024   # rows of 128 lanes per grid step (512 KiB f32)
_NUM_CORES = 2          # leading "parallel" grid axis (helps v7x, no-op v5e/v6e)


def _cdiv(a, b):
    return -(-a // b)


def _round_up(a, b):
    return _cdiv(a, b) * b


def _bpr_kernel(pos_ref, neg_ref, out_ref, *, n_elem, blk3, blocks_per_core):
    """One grid step: stable softplus(neg - pos) on a (blk3, 8, 128) block,
    masked against the valid-element count, reduced over the leading dim and
    accumulated into the resident (1, 8, 128) output block."""
    c = pl.program_id(0)   # core split (parallel)
    i = pl.program_id(1)   # block index within this core's range (arbitrary)

    @pl.when(i == 0)
    def _():
        out_ref[...] = jnp.zeros_like(out_ref)

    p = pos_ref[...].astype(jnp.float32)
    n = neg_ref[...].astype(jnp.float32)
    # -logsigmoid(p - n) == softplus(n - p), computed stably:
    #   softplus(x) = max(x, 0) + log1p(exp(-|x|))
    x = n - p
    sp = jnp.maximum(x, 0.0) + jnp.log1p(jnp.exp(-jnp.abs(x)))

    # In-kernel validity mask for the padded tail (no mask stream from HBM).
    shape = sp.shape  # (blk3, 8, 128)
    base_r3 = (c * blocks_per_core + i) * blk3
    r3 = jax.lax.broadcasted_iota(jnp.int32, shape, 0)
    s = jax.lax.broadcasted_iota(jnp.int32, shape, 1)
    l = jax.lax.broadcasted_iota(jnp.int32, shape, 2)
    gidx = ((base_r3 + r3) * _SUBLANES + s) * _LANES + l
    sp = jnp.where(gidx < n_elem, sp, 0.0)

    # Collapse only the leading dim (a short chain of (8,128) VPU adds);
    # the cross-lane reduce to a scalar happens once, in the wrapper.
    out_ref[...] += jnp.sum(sp, axis=0, keepdims=True)


@jax.jit
def bpr_loss(positives, negatives):
    assert positives.shape == negatives.shape, "expect same-shape inputs"
    out_dtype = jnp.result_type(positives.dtype, negatives.dtype)

    # ---- glue: flatten + pad to a (rows, 8, 128) slab (native dtype) ----
    p_flat = positives.reshape(-1)
    n_flat = negatives.reshape(-1)
    n_elem = p_flat.shape[0]

    rows = max(1, _cdiv(n_elem, _LANES))
    rows_per_core = _cdiv(rows, _NUM_CORES)
    row_block = min(_MAX_ROW_BLOCK, _round_up(rows_per_core, _SUBLANES))
    blocks_per_core = _cdiv(rows_per_core, row_block)
    rows_padded = _NUM_CORES * blocks_per_core * row_block
    pad = rows_padded * _LANES - n_elem

    if pad:
        p_flat = jnp.pad(p_flat, (0, pad))
        n_flat = jnp.pad(n_flat, (0, pad))

    blk3 = row_block // _SUBLANES
    r3_total = rows_padded // _SUBLANES
    p3 = p_flat.reshape(r3_total, _SUBLANES, _LANES)
    n3 = n_flat.reshape(r3_total, _SUBLANES, _LANES)

    kernel = functools.partial(
        _bpr_kernel, n_elem=n_elem, blk3=blk3, blocks_per_core=blocks_per_core
    )

    in_blk = pl.BlockSpec(
        (blk3, _SUBLANES, _LANES),
        lambda c, i: (c * blocks_per_core + i, 0, 0),
    )
    out_blk = pl.BlockSpec((1, _SUBLANES, _LANES), lambda c, i: (c, 0, 0))

    partials = pl.pallas_call(
        kernel,
        out_shape=jax.ShapeDtypeStruct((_NUM_CORES, _SUBLANES, _LANES), jnp.float32),
        grid_spec=pltpu.PrefetchScalarGridSpec(
            num_scalar_prefetch=0,
            grid=(_NUM_CORES, blocks_per_core),
            in_specs=[in_blk, in_blk],
            out_specs=out_blk,
        ),
        compiler_params=pltpu.CompilerParams(
            dimension_semantics=("parallel", "arbitrary"),
        ),
    )(p3, n3)

    # Single cheap cross-lane/sublane reduction to the scalar loss.
    return jnp.sum(partials).astype(out_dtype)


if __name__ == "__main__":
    key = jax.random.PRNGKey(0)
    kp, kn = jax.random.split(key)

    # small, deliberately non-(8,128)-aligned shape to exercise in-kernel masking
    positives = jax.random.normal(kp, (2, 100), dtype=jnp.float32)
    negatives = jax.random.normal(kn, (2, 100), dtype=jnp.float32)
    loss = jax.block_until_ready(bpr_loss(positives, negatives))
    ref = -jnp.sum(jax.nn.log_sigmoid(positives - negatives))
    assert jnp.allclose(loss, ref, rtol=1e-5, atol=1e-4), (loss, ref)

    # larger shape exercising multiple grid blocks per core and the 2-way split
    kp2, kn2 = jax.random.split(jax.random.PRNGKey(1))
    p_big = jax.random.normal(kp2, (300, 1000), dtype=jnp.float32)
    n_big = jax.random.normal(kn2, (300, 1000), dtype=jnp.float32)
    loss_big = jax.block_until_ready(bpr_loss(p_big, n_big))
    ref_big = -jnp.sum(jax.nn.log_sigmoid(p_big - n_big))
    assert jnp.allclose(loss_big, ref_big, rtol=1e-4, atol=1e-2), (loss_big, ref_big)

    print("KERNEL_OK")
</pallas_src>

<mosaic_0001>
module attributes {stable_mosaic.version = 11 : i64} {
  func.func @_bpr_kernel(%arg0: i32, %arg1: i32, %arg2: memref<1x8x128xf32, #tpu.memory_space<vmem>>, %arg3: memref<1x8x128xf32, #tpu.memory_space<vmem>>, %arg4: memref<1x8x128xf32, #tpu.memory_space<vmem>>) attributes {dimension_semantics = [#tpu.dimension_semantics<parallel>, #tpu.dimension_semantics<arbitrary>], iteration_bounds = array<i64: 2, 1>, scalar_prefetch = 0 : i64, scratch_operands = 0 : i64, tpu.core_type = #tpu.core_type<tc>, window_params = [{transform_indices = @transform_0, window_bounds = array<i64: 1, 8, 128>}, {transform_indices = @transform_1, window_bounds = array<i64: 1, 8, 128>}, {transform_indices = @transform_2, window_bounds = array<i64: 1, 8, 128>}]} {
    %c0_i32 = arith.constant 0 : i32
    %0 = arith.cmpi eq, %arg1, %c0_i32 : i32
    %1 = arith.extui %0 : i1 to i32
    %c0_i32_0 = arith.constant 0 : i32
    %2 = arith.cmpi ne, %1, %c0_i32_0 : i32
    scf.if %2 {
      %cst_16 = arith.constant 0.000000e+00 : f32
      %37 = vector.broadcast %cst_16 : f32 to vector<1x8x128xf32>
      %c0_17 = arith.constant 0 : index
      %c0_18 = arith.constant 0 : index
      %c0_19 = arith.constant 0 : index
      %38 = vector.load %arg4[%c0_17, %c0_18, %c0_19] : memref<1x8x128xf32, #tpu.memory_space<vmem>>, vector<1x8x128xf32>
      tpu.vector_store %arg4[%c0_17, %c0_18, %c0_19], %37 {strides = array<i32>} : memref<1x8x128xf32, #tpu.memory_space<vmem>>, vector<1x8x128xf32>,
    } else {
    }
    %c0 = arith.constant 0 : index
    %c0_1 = arith.constant 0 : index
    %c0_2 = arith.constant 0 : index
    %3 = vector.load %arg2[%c0, %c0_1, %c0_2] : memref<1x8x128xf32, #tpu.memory_space<vmem>>, vector<1x8x128xf32>
    %c0_3 = arith.constant 0 : index
    %c0_4 = arith.constant 0 : index
    %c0_5 = arith.constant 0 : index
    %4 = vector.load %arg3[%c0_3, %c0_4, %c0_5] : memref<1x8x128xf32, #tpu.memory_space<vmem>>, vector<1x8x128xf32>
    %5 = arith.subf %4, %3 : vector<1x8x128xf32>
    %cst = arith.constant 0.000000e+00 : f32
    %6 = vector.broadcast %cst : f32 to vector<1x8x128xf32>
    %7 = arith.maximumf %5, %6 : vector<1x8x128xf32>
    %8 = math.absf %5 : vector<1x8x128xf32>
    %cst_6 = arith.constant 0.000000e+00 : f32
    %9 = vector.broadcast %cst_6 : f32 to vector<1x8x128xf32>
    %10 = arith.subf %9, %8 : vector<1x8x128xf32>
    %11 = math.exp %10 : vector<1x8x128xf32>
    %12 = math.log1p %11 : vector<1x8x128xf32>
    %13 = arith.addf %7, %12 : vector<1x8x128xf32>
    %c1_i32 = arith.constant 1 : i32
    %14 = arith.muli %arg0, %c1_i32 : i32
    %15 = arith.addi %14, %arg1 : i32
    %c1_i32_7 = arith.constant 1 : i32
    %16 = arith.muli %15, %c1_i32_7 : i32
    %17 = tpu.iota {dimensions = array<i32: 0>} : vector<1x8x128xi32>
    %18 = tpu.iota {dimensions = array<i32: 1>} : vector<1x8x128xi32>
    %19 = tpu.iota {dimensions = array<i32: 2>} : vector<1x8x128xi32>
    %20 = vector.broadcast %16 : i32 to vector<1x8x128xi32>
    %21 = arith.addi %20, %17 : vector<1x8x128xi32>
    %c8_i32 = arith.constant 8 : i32
    %22 = vector.broadcast %c8_i32 : i32 to vector<1x8x128xi32>
    %23 = arith.muli %21, %22 : vector<1x8x128xi32>
    %24 = arith.addi %23, %18 : vector<1x8x128xi32>
    %c128_i32 = arith.constant 128 : i32
    %25 = vector.broadcast %c128_i32 : i32 to vector<1x8x128xi32>
    %26 = arith.muli %24, %25 : vector<1x8x128xi32>
    %27 = arith.addi %26, %19 : vector<1x8x128xi32>
    %c200_i32 = arith.constant 200 : i32
    %28 = vector.broadcast %c200_i32 : i32 to vector<1x8x128xi32>
    %29 = arith.cmpi slt, %27, %28 : vector<1x8x128xi32>
    %cst_8 = arith.constant 0.000000e+00 : f32
    %30 = vector.broadcast %cst_8 : f32 to vector<1x8x128xf32>
    %31 = arith.select %29, %13, %30 : vector<1x8x128xi1>, vector<1x8x128xf32>
    %c0_9 = arith.constant 0 : index
    %c0_10 = arith.constant 0 : index
    %c0_11 = arith.constant 0 : index
    %32 = vector.load %arg4[%c0_9, %c0_10, %c0_11] : memref<1x8x128xf32, #tpu.memory_space<vmem>>, vector<1x8x128xf32>
    %cst_12 = arith.constant dense<0.000000e+00> : vector<8x128xf32>
    %33 = vector.multi_reduction <add>, %31, %cst_12 [0] : vector<1x8x128xf32> to vector<8x128xf32>
    %34 = vector.shape_cast %33 : vector<8x128xf32> to vector<1x8x128xf32>
    %35 = arith.addf %32, %34 : vector<1x8x128xf32>
    %c0_13 = arith.constant 0 : index
    %c0_14 = arith.constant 0 : index
    %c0_15 = arith.constant 0 : index
    %36 = vector.load %arg4[%c0_13, %c0_14, %c0_15] : memref<1x8x128xf32, #tpu.memory_space<vmem>>, vector<1x8x128xf32>
    tpu.vector_store %arg4[%c0_13, %c0_14, %c0_15], %35 {strides = array<i32>} : memref<1x8x128xf32, #tpu.memory_space<vmem>>, vector<1x8x128xf32>,
    return
  }
  func.func @transform_0(%arg0: i32, %arg1: i32) -> (i32, i32, i32) {
    %c1_i32 = arith.constant 1 : i32
    %0 = arith.muli %arg0, %c1_i32 : i32
    %1 = arith.addi %0, %arg1 : i32
    %c0_i32 = arith.constant 0 : i32
    %c0_i32_0 = arith.constant 0 : i32
    %c0_i32_1 = arith.constant 0 : i32
    return %1, %c0_i32, %c0_i32_0 : i32, i32, i32
  }
  func.func @transform_1(%arg0: i32, %arg1: i32) -> (i32, i32, i32) {
    %c1_i32 = arith.constant 1 : i32
    %0 = arith.muli %arg0, %c1_i32 : i32
    %1 = arith.addi %0, %arg1 : i32
    %c0_i32 = arith.constant 0 : i32
    %c0_i32_0 = arith.constant 0 : i32
    %c0_i32_1 = arith.constant 0 : i32
    return %1, %c0_i32, %c0_i32_0 : i32, i32, i32
  }
  func.func @transform_2(%arg0: i32, %arg1: i32) -> (i32, i32, i32) {
    %c0_i32 = arith.constant 0 : i32
    %c0_i32_0 = arith.constant 0 : i32
    %c0_i32_1 = arith.constant 0 : i32
    return %arg0, %c0_i32, %c0_i32_0 : i32, i32, i32
  }
}

</mosaic_0001>

<bundles_post_ra>
// kernel: bpr_loss.1
= control target key start
LH: loop header
LB: loop body
LE: loop exit
PB: predicated region body
PF: predicated region fallthrough
CT: control target
= control target key end

     0   :  { %s372_s9 = smov 0   ;;  %s374_s10 = smov 0   ;;  %s413_s0 = inlined_call_operand.vmem [shape: f32[2,8,128], index: 0, kind: input, shape index: {}]   ;;  %s414_s1 = inlined_call_operand.vmem [shape: f32[2,8,128], index: 1, kind: input, shape index: {}]   ;;  %s415_s2 = inlined_call_operand.vmem [shape: f32[2,8,128], index: 2, kind: output, shape index: {}]  }
   0x1   :  { %s376_s11 = smov 0  }
   0x2 LB: > { %s24_s12 = sadd.s32 1, %s351_s10  ;;  %p298_p0 = scmp.ge.s32.totalorder %s355_s11, 1  ;;  %s355_s11 = sphi %s376_s11, %s12_s11   ;;  %s351_s10 = sphi %s374_s10, %s417_s10   ;;  %s347_s9 = sphi %s372_s9, %s416_s9  }
   0x3   : > { %p26_p1 = scmp.ge.s32.totalorder %s24_s12, 2  ;;  %p140_p2 = scmp.lt.s32.totalorder %s355_s11, 3 }
   0x5   : > { %s419_s12 = smov (%p26_p1, %s24_s12), 0  ;;  %p141_p3 = pnand %p298_p0, %p140_p2 }
   0x6   : > { %p167_p4 = scmp.lt.s32.totalorder (!%p141_p3), %s347_s9, 1 }
   0x7   : > { %144 = sbr.rel (%p141_p3) target bundleno = 49 (0x31), region = 28 }
   0xc   : > { %s168_s13 = scalar_select %p167_p4, %s347_s9, 1  ;;  %v206_v6 = vlaneseq  ;;  %v210_v7 = vstv %s347_s9 }
   0xd   : > { %v211_v9 = vmul.u32 8, %v210_v7 }
   0xe   : > { %s390_s14 = sshll.u32 %s168_s13, 3  ;;  %v207_v8 = vshrl.u32 %v206_v6, 7  ;;  %v209_v15 = vand.u32 127, %v206_v6 }
   0xf   : > { %s170_s17 = scalar_lea.vmem %s413_s0, %s390_s14  ;;  %s176_s20 = scalar_lea.vmem %s414_s1, %s390_s14 }
  0x10   : > { %v187_v0 = vld [vmem:[%s170_s17] sm:$0xff]  ;;  %v212_v11 = vadd.s32 %v211_v9, %v207_v8  ;;  %s181_s23 = scalar_lea.vmem %s415_s2, %s390_s14 }
  0x11   : > { %v188_v1 = vld [vmem:[%s176_s20] sm:$0xff] }
  0x12   : > { %v189_v2 = vsub.f32 %v188_v1, %v187_v0  ;;  %v213_v16 = vmul.u32 128, %v212_v11 }
  0x14   : > { %v191_v3 = vand.u32 2147483647, %v189_v2  ;;  %v214_v19 = vadd.s32 %v213_v16, %v209_v15  ;;  %v190_v21 = vmax.f32 %v189_v2, 0.0 }
  0x16   : > { %v192_v4 = vsub.f32 0.0, %v191_v3  ;;  %vm215_vm1 = vcmp.lt.s32.totalorder %v214_v19, 200 }
  0x18   : > { %v193_v5 = vmul.f32 1.442695, %v192_v4 }
  0x1a   : > { %329 = vpow2.f32 %v193_v5 }
  0x20   : > { %v330_v10 = vpop.eup %329 }
  0x21   : > { %v195_v12 = vadd.f32 1.0, %v330_v10  ;;  %v198_v13 = vmul.f32 -0.5, %v330_v10  ;;  %v201_v17 = vand.u32 2147483647, %v330_v10 }
  0x23   : > { %331 = vlog2.f32 %v195_v12  ;;  %v199_v14 = vadd.f32 1.0, %v198_v13  ;;  %vm202_vm0 = vcmp.lt.f32.partialorder %v201_v17, 0.0004427343 }
  0x25   : > { %v200_v18 = vmul.f32 %v330_v10, %v199_v14 }
  0x29   : > { %v332_v20 = vpop.eup %331 }
  0x2a   : > { %v197_v22 = vmul.f32 0.6931472, %v332_v20 }
  0x2c   : > { %v203_v23 = vsel %vm202_vm0, %v200_v18, %v197_v22 }
  0x2d   : > { %v204_v24 = vadd.f32 %v203_v23, %v190_v21 }
  0x2f   : > { %v216_v25 = vsel %vm215_vm1, %v204_v24, 0.0 }
  0x30   : > { %220 = vst [vmem:[%s181_s23] sm:$0xff] %v216_v25 }
  0x31 PF: > { %s12_s11 = sadd.s32 1, %s355_s11   ;;  %s416_s9 = smov %s351_s10 }
  0x32   : > { %p9_p5 = scmp.ge.s32.totalorder %s12_s11, 4   ;;  %s417_s10 = smov %s419_s12 }
  0x34   :  { %11 = sbr.rel (!%p9_p5) target bundleno = 2 (0x2), region = 65 }

</bundles_post_ra>
